<compile_context>
chip_gen: v5e
topology: v5e:2x2
jax: 0.10.0
libtpu: 0.0.40
codegen_flags: <defaults>
</compile_context>

<pallas_src>
import functools
import math

import jax
import jax.numpy as jnp
from jax import lax
from jax.experimental import pallas as pl
from jax.experimental.pallas import tpu as pltpu


_MAX_BATCH_PACK = 32  # static-unroll cap (code size / compile-time bound)


def _embed_kernel_marks(x_ref, xm_ref, w_ref, posb_ref, o_ref, *, tb, n_values):
    # x_ref:    (tb, L, V)   raw (un-transposed) values block
    # xm_ref:   (tb, L, M)   raw (un-transposed) mark block
    # w_ref:    (L, td)      value-embedding weight tile
    # posb_ref: (Vp, td)     position tile with the linear bias pre-folded in
    # o_ref:    (tb, Vp, td)
    w = w_ref[...]
    posb = posb_ref[...].astype(jnp.float32)
    posb_v = posb[:n_values, :]     # hoisted out of the loop
    posb_m = posb[n_values:, :]
    for t in range(tb):  # static unroll; tb bounded by _MAX_BATCH_PACK
        # Contract the sequence axis L directly against W: this *is*
        # permute(0, 2, 1) fused into the matmul -- no transpose anywhere.
        acc_v = lax.dot_general(x_ref[t], w, (((0,), (0,)), ((), ())),
                                preferred_element_type=jnp.float32)   # (V, td)
        acc_m = lax.dot_general(xm_ref[t], w, (((0,), (0,)), ((), ())),
                                preferred_element_type=jnp.float32)   # (M, td)
        # No sublane concat: write the two results to disjoint row ranges.
        o_ref[t, :n_values, :] = (acc_v + posb_v).astype(o_ref.dtype)
        o_ref[t, n_values:, :] = (acc_m + posb_m).astype(o_ref.dtype)


def _embed_kernel_nomarks(x_ref, w_ref, posb_ref, o_ref, *, tb):
    w = w_ref[...]
    posb = posb_ref[...].astype(jnp.float32)
    for t in range(tb):
        acc = lax.dot_general(x_ref[t], w, (((0,), (0,)), ((), ())),
                              preferred_element_type=jnp.float32)     # (V, td)
        o_ref[t] = (acc + posb).astype(o_ref.dtype)


def _round_up(n, m):
    return ((n + m - 1) // m) * m


def _padded_block_bytes(tb, td, L, V, M, Vp, in_isz, w_isz, out_isz):
    """Padded VMEM footprint of one grid step (lane/sublane tiling + 2x buf)."""
    pL = _round_up(max(L, 1), 8)
    x_blk = tb * pL * _round_up(V, 128) * in_isz
    xm_blk = tb * pL * _round_up(M, 128) * in_isz if M else 0
    w_blk = pL * _round_up(td, 128) * w_isz
    p_blk = _round_up(Vp, 8) * _round_up(td, 128) * 4
    o_blk = tb * _round_up(Vp, 8) * _round_up(td, 128) * out_isz
    # Every pipelined stream (inputs and output) is double-buffered.
    return 2 * (x_blk + xm_blk + w_blk + p_blk + o_blk)


def _physical_vmem_bytes():
    try:
        return int(pltpu.get_tpu_info().vmem_capacity_bytes)
    except Exception:
        return 64 << 20  # conservative fallback: v7x per-TensorCore VMEM


def _pick_tiles(B, D, L, V, M, Vp, in_isz, w_isz, out_isz, budget):
    # Prefer full-D tiles (fewest grid steps, widest unmasked stores); only
    # split D into lane-multiple tiles when the padded VMEM budget demands it.
    d_cands = [D] + [t for t in (2048, 1024, 512, 256, 128) if t < D and D % t == 0]
    b_divs = sorted((d for d in range(1, min(B, _MAX_BATCH_PACK) + 1) if B % d == 0),
                    reverse=True)
    for td in d_cands:
        for tb in b_divs:
            if _padded_block_bytes(tb, td, L, V, M, Vp,
                                   in_isz, w_isz, out_isz) <= budget:
                return tb, td
    return 1, d_cands[-1]  # best effort; wrapper raises vmem_limit accordingly


def data_embedding_inverted(x, w, b, pos_emb, x_mark=None, compute_dtype=None):
    """x: [B, L, V], x_mark: [B, L, M] or None, w: [L, D], b: [D], pos_emb: [1, P, D].

    Returns [B, V(+M), D] = Linear_{L->D}(permute(x) [cat marks]) + pos_emb[:, :V(+M)].
    compute_dtype=jnp.bfloat16 streams x/x_mark/w and the output as bf16
    (f32 accumulate + f32 pos/bias add are kept), halving HBM traffic.
    """
    if compute_dtype is not None:
        x = x.astype(compute_dtype)
        w = w.astype(compute_dtype)
        if x_mark is not None:
            x_mark = x_mark.astype(compute_dtype)

    B, L, V = x.shape
    D = w.shape[1]
    M = 0 if x_mark is None else x_mark.shape[2]
    Vp = V + M
    assert pos_emb.shape[1] >= Vp, "position table shorter than number of variates"
    out_dtype = x.dtype

    # Fold the linear bias into the (small) position table: one fewer input
    # stream and one fewer broadcast-add inside the kernel.
    posb = pos_emb[0, :Vp, :].astype(jnp.float32) + b.astype(jnp.float32)[None, :]

    in_isz = jnp.dtype(x.dtype).itemsize
    w_isz = jnp.dtype(w.dtype).itemsize
    out_isz = jnp.dtype(out_dtype).itemsize

    phys_vmem = _physical_vmem_bytes()
    budget = int(phys_vmem * 0.6)   # headroom for Mosaic scratch / semaphores
    tb, td = _pick_tiles(B, D, L, V, M, Vp, in_isz, w_isz, out_isz, budget)

    # v7x shards "parallel" grid axes across its 2 TensorCores: keep >= 2
    # blocks when possible. One extra grid step is noise on single-TC chips.
    if B // tb == 1 and D // td == 1:
        if B >= 2:
            tb = max(d for d in range(1, B) if B % d == 0 and d <= _MAX_BATCH_PACK)
        elif D % 256 == 0:
            td = D // 2

    grid = (B // tb, D // td)

    blk_bytes = _padded_block_bytes(tb, td, L, V, M, Vp, in_isz, w_isz, out_isz)
    vmem_limit = int(min(max(32 << 20, blk_bytes + (4 << 20)),
                         int(phys_vmem * 0.9)))

    flops = 2 * B * Vp * L * D
    bytes_accessed = int(x.size * in_isz
                         + (x_mark.size * in_isz if M else 0)
                         + w.size * w_isz
                         + posb.size * 4
                         + B * Vp * D * out_isz)
    cost = pl.CostEstimate(flops=flops, transcendentals=0,
                           bytes_accessed=bytes_accessed)

    compiler_params = pltpu.CompilerParams(
        dimension_semantics=("parallel", "parallel"),
        vmem_limit_bytes=vmem_limit)

    out_shape = jax.ShapeDtypeStruct((B, Vp, D), out_dtype)
    # TODO(synk): if xprof shows exposed DMA on the narrow x/x_mark streams,
    # add pipeline_mode=pl.Buffered(3) to x_spec/xm_spec (re-check v7x budget).
    x_spec = pl.BlockSpec((tb, L, V), lambda bi, di: (bi, 0, 0))
    w_spec = pl.BlockSpec((L, td), lambda bi, di: (0, di))
    posb_spec = pl.BlockSpec((Vp, td), lambda bi, di: (0, di))
    out_spec = pl.BlockSpec((tb, Vp, td), lambda bi, di: (bi, 0, di))

    if M:
        xm_spec = pl.BlockSpec((tb, L, M), lambda bi, di: (bi, 0, 0))
        out = pl.pallas_call(
            functools.partial(_embed_kernel_marks, tb=tb, n_values=V),
            out_shape=out_shape,
            grid_spec=pltpu.PrefetchScalarGridSpec(
                num_scalar_prefetch=0,
                grid=grid,
                in_specs=[x_spec, xm_spec, w_spec, posb_spec],
                out_specs=out_spec),
            compiler_params=compiler_params,
            cost_estimate=cost,
        )(x, x_mark, w, posb)
    else:
        out = pl.pallas_call(
            functools.partial(_embed_kernel_nomarks, tb=tb),
            out_shape=out_shape,
            grid_spec=pltpu.PrefetchScalarGridSpec(
                num_scalar_prefetch=0,
                grid=grid,
                in_specs=[x_spec, w_spec, posb_spec],
                out_specs=out_spec),
            compiler_params=compiler_params,
            cost_estimate=cost,
        )(x, w, posb)

    # dropout: eval-mode identity (PyTorch nn.Dropout is a no-op at inference).
    # TODO(synk): training-mode dropout would use pltpu.prng_seed/prng_random_bits.
    return out


if __name__ == "__main__":
    key = jax.random.PRNGKey(0)
    # small shapes: batch=2, seq_len (c_in)=8, n_variates=4, marks=3, d_model=32
    B, L, V, M, D = 2, 8, 4, 3, 32

    k1, k2, k3, k4, k5 = jax.random.split(key, 5)
    x = jax.random.normal(k1, (B, L, V), dtype=jnp.float32)
    x_mark = jax.random.normal(k2, (B, L, M), dtype=jnp.float32)

    # deterministic parameter init (shapes per nn.Linear(c_in=L, d_model=D) and
    # nn.Parameter(torch.randn(1, 500, D)))
    bound = 1.0 / math.sqrt(L)
    w = jax.random.uniform(k3, (L, D), minval=-bound, maxval=bound, dtype=jnp.float32)
    b = jax.random.uniform(k4, (D,), minval=-bound, maxval=bound, dtype=jnp.float32)
    pos_emb = jax.random.normal(k5, (1, 500, D), dtype=jnp.float32)

    # reference (PyTorch semantics)
    x_inv = jnp.concatenate(
        [jnp.transpose(x, (0, 2, 1)), jnp.transpose(x_mark, (0, 2, 1))], axis=1)
    ref = x_inv @ w + b[None, None, :] + pos_emb[:, :V + M, :]
    ref2 = jnp.transpose(x, (0, 2, 1)) @ w + b[None, None, :] + pos_emb[:, :V, :]

    # f32 path, with marks
    out = jax.block_until_ready(data_embedding_inverted(x, w, b, pos_emb, x_mark=x_mark))
    assert out.shape == (B, V + M, D)
    assert jnp.allclose(out, ref, atol=1e-5, rtol=1e-5)

    # f32 path, without marks
    out2 = jax.block_until_ready(data_embedding_inverted(x, w, b, pos_emb))
    assert out2.shape == (B, V, D)
    assert jnp.allclose(out2, ref2, atol=1e-5, rtol=1e-5)

    # bf16 streaming path (perf-review item): f32 accumulate, bf16 in/out.
    out_bf = jax.block_until_ready(
        data_embedding_inverted(x, w, b, pos_emb, x_mark=x_mark,
                                compute_dtype=jnp.bfloat16))
    assert out_bf.shape == (B, V + M, D)
    assert out_bf.dtype == jnp.bfloat16
    assert jnp.allclose(out_bf.astype(jnp.float32), ref, atol=6e-2, rtol=6e-2)

    print("KERNEL_OK")
</pallas_src>

<mosaic_0001>
module attributes {stable_mosaic.version = 11 : i64} {
  func.func @_embed_kernel_marks(%arg0: i32, %arg1: i32, %arg2: memref<1x8x4xf32, #tpu.memory_space<vmem>>, %arg3: memref<1x8x3xf32, #tpu.memory_space<vmem>>, %arg4: memref<8x32xf32, #tpu.memory_space<vmem>>, %arg5: memref<7x32xf32, #tpu.memory_space<vmem>>, %arg6: memref<1x7x32xf32, #tpu.memory_space<vmem>>) attributes {dimension_semantics = [#tpu.dimension_semantics<parallel>, #tpu.dimension_semantics<parallel>], iteration_bounds = array<i64: 2, 1>, scalar_prefetch = 0 : i64, scratch_operands = 0 : i64, tpu.core_type = #tpu.core_type<tc>, window_params = [{transform_indices = @transform_0, window_bounds = array<i64: 1, 8, 4>}, {transform_indices = @transform_1, window_bounds = array<i64: 1, 8, 3>}, {transform_indices = @transform_2, window_bounds = array<i64: 8, 32>}, {transform_indices = @transform_3, window_bounds = array<i64: 7, 32>}, {transform_indices = @transform_4, window_bounds = array<i64: 1, 7, 32>}]} {
    %c0 = arith.constant 0 : index
    %c0_0 = arith.constant 0 : index
    %0 = vector.load %arg4[%c0, %c0_0] : memref<8x32xf32, #tpu.memory_space<vmem>>, vector<8x32xf32>
    %c0_1 = arith.constant 0 : index
    %c0_2 = arith.constant 0 : index
    %1 = vector.load %arg5[%c0_1, %c0_2] : memref<7x32xf32, #tpu.memory_space<vmem>>, vector<7x32xf32>
    %2 = vector.extract_strided_slice %1 {offsets = [0, 0], sizes = [4, 32], strides = [1, 1]} : vector<7x32xf32> to vector<4x32xf32>
    %3 = vector.extract_strided_slice %1 {offsets = [4, 0], sizes = [3, 32], strides = [1, 1]} : vector<7x32xf32> to vector<3x32xf32>
    %c0_3 = arith.constant 0 : index
    %c0_4 = arith.constant 0 : index
    %c0_5 = arith.constant 0 : index
    %4 = vector.load %arg2[%c0_3, %c0_4, %c0_5] : memref<1x8x4xf32, #tpu.memory_space<vmem>>, vector<1x8x4xf32>
    %5 = vector.shape_cast %4 : vector<1x8x4xf32> to vector<8x4xf32>
    %cst = arith.constant dense<0.000000e+00> : vector<4x32xf32>
    %6 = tpu.matmul %5, %0, %cst {dimension_numbers = #tpu.dot_dimension_numbers<[0], [0], [1], [1], [0, 1, 1, 1], [], []>} : vector<8x4xf32>, vector<8x32xf32>, vector<4x32xf32> -> vector<4x32xf32>
    %c0_6 = arith.constant 0 : index
    %c0_7 = arith.constant 0 : index
    %c0_8 = arith.constant 0 : index
    %7 = vector.load %arg3[%c0_6, %c0_7, %c0_8] : memref<1x8x3xf32, #tpu.memory_space<vmem>>, vector<1x8x3xf32>
    %8 = vector.shape_cast %7 : vector<1x8x3xf32> to vector<8x3xf32>
    %cst_9 = arith.constant dense<0.000000e+00> : vector<3x32xf32>
    %9 = tpu.matmul %8, %0, %cst_9 {dimension_numbers = #tpu.dot_dimension_numbers<[0], [0], [1], [1], [0, 1, 1, 1], [], []>} : vector<8x3xf32>, vector<8x32xf32>, vector<3x32xf32> -> vector<3x32xf32>
    %10 = arith.addf %6, %2 : vector<4x32xf32>
    %c0_10 = arith.constant 0 : index
    %c0_11 = arith.constant 0 : index
    %c0_12 = arith.constant 0 : index
    %11 = vector.load %arg6[%c0_10, %c0_11, %c0_12] : memref<1x7x32xf32, #tpu.memory_space<vmem>>, vector<1x4x32xf32>
    %12 = vector.shape_cast %11 : vector<1x4x32xf32> to vector<4x32xf32>
    %13 = vector.shape_cast %10 : vector<4x32xf32> to vector<1x4x32xf32>
    tpu.vector_store %arg6[%c0_10, %c0_11, %c0_12], %13 {strides = array<i32>} : memref<1x7x32xf32, #tpu.memory_space<vmem>>, vector<1x4x32xf32>,
    %14 = arith.addf %9, %3 : vector<3x32xf32>
    %c0_13 = arith.constant 0 : index
    %c4 = arith.constant 4 : index
    %c0_14 = arith.constant 0 : index
    %15 = vector.load %arg6[%c0_13, %c4, %c0_14] : memref<1x7x32xf32, #tpu.memory_space<vmem>>, vector<1x3x32xf32>
    %16 = vector.shape_cast %15 : vector<1x3x32xf32> to vector<3x32xf32>
    %17 = vector.shape_cast %14 : vector<3x32xf32> to vector<1x3x32xf32>
    tpu.vector_store %arg6[%c0_13, %c4, %c0_14], %17 {strides = array<i32>} : memref<1x7x32xf32, #tpu.memory_space<vmem>>, vector<1x3x32xf32>,
    return
  }
  func.func @transform_0(%arg0: i32, %arg1: i32) -> (i32, i32, i32) {
    %c0_i32 = arith.constant 0 : i32
    %c0_i32_0 = arith.constant 0 : i32
    %c0_i32_1 = arith.constant 0 : i32
    return %arg0, %c0_i32, %c0_i32_0 : i32, i32, i32
  }
  func.func @transform_1(%arg0: i32, %arg1: i32) -> (i32, i32, i32) {
    %c0_i32 = arith.constant 0 : i32
    %c0_i32_0 = arith.constant 0 : i32
    %c0_i32_1 = arith.constant 0 : i32
    return %arg0, %c0_i32, %c0_i32_0 : i32, i32, i32
  }
  func.func @transform_2(%arg0: i32, %arg1: i32) -> (i32, i32) {
    %c0_i32 = arith.constant 0 : i32
    %c0_i32_0 = arith.constant 0 : i32
    return %c0_i32, %arg1 : i32, i32
  }
  func.func @transform_3(%arg0: i32, %arg1: i32) -> (i32, i32) {
    %c0_i32 = arith.constant 0 : i32
    %c0_i32_0 = arith.constant 0 : i32
    return %c0_i32, %arg1 : i32, i32
  }
  func.func @transform_4(%arg0: i32, %arg1: i32) -> (i32, i32, i32) {
    %c0_i32 = arith.constant 0 : i32
    %c0_i32_0 = arith.constant 0 : i32
    return %arg0, %c0_i32, %arg1 : i32, i32, i32
  }
}

</mosaic_0001>

<bundles_post_ra>
// kernel: tpu_custom_call.1
= control target key start
LH: loop header
LB: loop body
LE: loop exit
PB: predicated region body
PF: predicated region fallthrough
CT: control target
= control target key end

     0   :  { %s588_s15 = smov 0   ;;  %s590_s16 = smov 0   ;;  %s630_s0 = inlined_call_operand.vmem [shape: f32[2,8,4], index: 0, kind: input, shape index: {}]   ;;  %s631_s1 = inlined_call_operand.vmem [shape: f32[2,8,3], index: 1, kind: input, shape index: {}]   ;;  %s632_s2 = inlined_call_operand.vmem [shape: f32[8,32], index: 2, kind: input, shape index: {}]   ;;  %s633_s3 = inlined_call_operand.vmem [shape: f32[7,32], index: 3, kind: input, shape index: {}]   ;;  %s634_s4 = inlined_call_operand.vmem [shape: f32[2,7,32], index: 4, kind: output, shape index: {}]  }
   0x1   :  { %s592_s17 = smov 0  }
   0x2 LB: > { %s26_s18 = sadd.s32 1, %s557_s16  ;;  %p506_p0 = scmp.ge.s32.totalorder %s561_s17, 1  ;;  %s561_s17 = sphi %s592_s17, %s14_s17   ;;  %s557_s16 = sphi %s590_s16, %s636_s16   ;;  %s553_s15 = sphi %s588_s15, %s635_s15  }
   0x3   : > { %p28_p1 = scmp.ge.s32.totalorder %s26_s18, 2  ;;  %p202_p2 = scmp.lt.s32.totalorder %s561_s17, 3 }
   0x5   : > { %s638_s18 = smov (%p28_p1, %s26_s18), 0  ;;  %p203_p3 = pnand %p506_p0, %p202_p2 }
   0x6   : > { %p241_p4 = scmp.lt.s32.totalorder (!%p203_p3), %s553_s15, 1 }
   0x7   : > { %206 = sbr.rel (%p203_p3) target bundleno = 318 (0x13e), region = 36 }
   0xc   : > { %v264_v0 = vld [vmem:[%s632_s2] sm:$0xff]  ;;  %s640_s15 = smov (!%p241_p4, %s553_s15), 1  ;;  %vm300_vm0 = vcmask 64512   ;;  %vm324_vm1 = vcmask 257024   ;;  %vm384_vm2 = vcmask 256000  }
   0xd   : > { %319 = vmatpush.msra.mxu0 %v264_v0  ;;  %379 = vmatpush.msra.mxu1 %v264_v0  ;;  %s507_s21 = sshll.u32 %s640_s15, 3  ;;  %v265_v5 = vld [vmem:[%s633_s3] sm:$0x7f] }
   0xe   : > { %s244_s24 = scalar_lea.vmem %s630_s0, %s507_s21  ;;  %s248_s27 = scalar_lea.vmem %s631_s1, %s507_s21  ;;  %v359_v8 = vrot.slane %v265_v5, 4 }
   0xf   : > { %v266_v1 = vld [vmem:[%s244_s24] sm:$0xff]  ;;  %s263_s6 = scalar_lea.vmem %s634_s4, %s507_s21 }
  0x10   : > { %268 = vxpose.xlu0.b32.start.end [1/1] (short) (narrow) %v266_v1, 8  ;;  %v267_v2 = vld [vmem:[%s248_s27] sm:$0xff] }
  0x18   : > { %326 = vxpose.xlu0.b32.start.end [1/1] (short) (narrow) %v267_v2, 8 }
  0xb4   : > { %v284_v3 = vpop.trf.xlu0 }
  0xb5   : > { %510 = vmatmul.msk.f32.vlgmr.msra.gmra.mxu0 %vm300_vm0, %v284_v3 }
  0xbc   : > { %v342_v4 = vpop.trf.xlu0 }
  0xbd   : > { %511 = vmatmul.msk.f32.vlgmr.msra.gmra.mxu1 %vm300_vm0, %v342_v4 }
 0x132   : > { %v321_v6 = vpop.f32.mrf.mxu0 }
 0x133   : > { %v322_v7 = vadd.f32 %v321_v6, %v265_v5 }
 0x135   : > { %325 = vst.msk [vmem:[%s263_s6] sm:$0xf] %vm324_vm1, %v322_v7 }
 0x13a   : > { %v381_v9 = vpop.f32.mrf.mxu1 }
 0x13b   : > { %v382_v10 = vadd.f32 %v381_v9, %v359_v8 }
 0x13d   : > { %385 = vst.msk [vmem:[%s263_s6 + $0x4] sm:$0x7] %vm384_vm2, %v382_v10 }
 0x13e PF: > { %s14_s17 = sadd.s32 1, %s561_s17   ;;  %s635_s15 = smov %s557_s16 }
 0x13f   : > { %p11_p5 = scmp.ge.s32.totalorder %s14_s17, 4   ;;  %s636_s16 = smov %s638_s18 }
 0x141   :  { %13 = sbr.rel (!%p11_p5) target bundleno = 2 (0x2), region = 75 }

</bundles_post_ra>
